<compile_context>
chip_gen: v5e
topology: v5e:2x2
jax: 0.10.0
libtpu: 0.0.40
codegen_flags: <defaults>
</compile_context>

<pallas_src>
import jax
import jax.numpy as jnp
from jax.experimental import pallas as pl
from jax.experimental.pallas import tpu as pltpu

_LANES = 128


def _affine_kernel(params_ref, x_ref, o_ref):
    # params_ref: SMEM (2,)  -> [w, b] scalars
    # x_ref:      VMEM lane-dense block of the flattened batch
    # o_ref:      VMEM lane-dense block of the output
    w = params_ref[0]
    b = params_ref[1]
    o_ref[...] = x_ref[...] * w + b


def linear_pallas(x, weight, bias, *, block_rows=512):
    """y = x @ weight.T + bias for the 1->1 Linear of `Net`.

    x:      (N, 1) float32
    weight: (1, 1) float32
    bias:   (1,)   float32
    """
    n, in_f = x.shape
    out_f = weight.shape[0]
    assert in_f == 1 and out_f == 1, "Net.lin1 is Linear(1, 1)"

    # Pack the two scalars into one tiny array; it lives in SMEM inside the
    # kernel (no padded VMEM tile, no extra DMA per operand).
    params = jnp.concatenate([weight.reshape(-1), bias.reshape(-1)]).astype(x.dtype)

    flat = x.reshape(-1)  # (N,) — batch will map to lanes (lane-dense)

    block_elems = block_rows * _LANES
    if n <= block_elems:
        # Small-N path: single kernel invocation, no grid, whole arrays in VMEM.
        y = pl.pallas_call(
            _affine_kernel,
            out_shape=jax.ShapeDtypeStruct((1, n), x.dtype),
            in_specs=[
                pl.BlockSpec(memory_space=pltpu.MemorySpace.SMEM),
                pl.BlockSpec(memory_space=pltpu.MemorySpace.VMEM),
            ],
            out_specs=pl.BlockSpec(memory_space=pltpu.MemorySpace.VMEM),
        )(params, flat.reshape(1, n))
        return y.reshape(n, out_f)

    # Large-N path: pad to a multiple of (block_rows * 128), lay out as
    # (rows, 128) lane-dense, and grid over row-blocks. block_rows is a
    # multiple of 8 (sublane tiling) and 512*128*4B*2buf ≈ 0.5 MiB, well
    # under v7x's 64 MiB VMEM; the batch axis is "parallel" so v7x's two
    # TensorCores split the loop.
    padded = block_elems * pl.cdiv(n, block_elems)
    xp = jnp.pad(flat, (0, padded - n)).reshape(padded // _LANES, _LANES)
    num_blocks = padded // block_elems

    y = pl.pallas_call(
        _affine_kernel,
        out_shape=jax.ShapeDtypeStruct(xp.shape, x.dtype),
        grid=(num_blocks,),
        in_specs=[
            pl.BlockSpec(memory_space=pltpu.MemorySpace.SMEM),
            pl.BlockSpec((block_rows, _LANES), lambda i: (i, 0)),
        ],
        out_specs=pl.BlockSpec((block_rows, _LANES), lambda i: (i, 0)),
        compiler_params=pltpu.CompilerParams(
            dimension_semantics=("parallel",)
        ),
    )(params, xp)
    return y.reshape(-1)[:n].reshape(n, out_f)


if __name__ == "__main__":
    key = jax.random.PRNGKey(0)
    k_x, k_w, k_b = jax.random.split(key, 3)

    # Shapes consistent with Net: Linear(1 -> 1), batch of 8 samples.
    N, IN_F, OUT_F = 8, 1, 1

    x = jax.random.normal(k_x, (N, IN_F), dtype=jnp.float32)
    # Deterministic parameter init (mimics torch's uniform(-1/sqrt(in), 1/sqrt(in)))
    bound = 1.0 / (IN_F ** 0.5)
    weight = jax.random.uniform(k_w, (OUT_F, IN_F), jnp.float32, -bound, bound)
    bias = jax.random.uniform(k_b, (OUT_F,), jnp.float32, -bound, bound)

    # Small-N path (no grid).
    y = linear_pallas(x, weight, bias)
    jax.block_until_ready(y)
    y_ref = x @ weight.T + bias
    assert y.shape == (N, OUT_F)
    assert jnp.allclose(y, y_ref, atol=1e-6, rtol=1e-6)

    # Also exercise the tiled (gridded, lane-dense) path with a modest N.
    N2 = 2000
    x2 = jax.random.normal(jax.random.PRNGKey(1), (N2, IN_F), dtype=jnp.float32)
    y2 = linear_pallas(x2, weight, bias, block_rows=8)
    jax.block_until_ready(y2)
    y2_ref = x2 @ weight.T + bias
    assert y2.shape == (N2, OUT_F)
    assert jnp.allclose(y2, y2_ref, atol=1e-6, rtol=1e-6)

    print("KERNEL_OK")
</pallas_src>

<mosaic_0001>
module attributes {stable_mosaic.version = 11 : i64} {
  func.func @_affine_kernel(%arg0: memref<2xf32, #tpu.memory_space<smem>>, %arg1: memref<1x8xf32, #tpu.memory_space<vmem>>, %arg2: memref<1x8xf32, #tpu.memory_space<vmem>>) attributes {dimension_semantics = [], scalar_prefetch = 0 : i64, scratch_operands = 0 : i64, tpu.core_type = #tpu.core_type<tc>} {
    %c0 = arith.constant 0 : index
    %0 = memref.load %arg0[%c0] : memref<2xf32, #tpu.memory_space<smem>>
    %c1 = arith.constant 1 : index
    %1 = memref.load %arg0[%c1] : memref<2xf32, #tpu.memory_space<smem>>
    %c0_0 = arith.constant 0 : index
    %c0_1 = arith.constant 0 : index
    %2 = vector.load %arg1[%c0_0, %c0_1] : memref<1x8xf32, #tpu.memory_space<vmem>>, vector<1x8xf32>
    %3 = vector.broadcast %0 : f32 to vector<1x8xf32>
    %4 = arith.mulf %2, %3 : vector<1x8xf32>
    %5 = vector.broadcast %1 : f32 to vector<1x8xf32>
    %6 = arith.addf %4, %5 : vector<1x8xf32>
    %c0_2 = arith.constant 0 : index
    %c0_3 = arith.constant 0 : index
    %7 = vector.load %arg2[%c0_2, %c0_3] : memref<1x8xf32, #tpu.memory_space<vmem>>, vector<1x8xf32>
    tpu.vector_store %arg2[%c0_2, %c0_3], %6 {strides = array<i32>} : memref<1x8xf32, #tpu.memory_space<vmem>>, vector<1x8xf32>,
    return
  }
}

</mosaic_0001>

<bundles_post_ra>
// kernel: tpu_custom_call.1
= control target key start
LH: loop header
LB: loop body
LE: loop exit
PB: predicated region body
PF: predicated region fallthrough
CT: control target
= control target key end

     0   :  { %7 = vsyncpa [#allocation5], 0  ;;  %s163_s0 = inlined_call_operand.hbm [shape: f32[2], index: 0, kind: input, shape index: {}]   ;;  %s164_s1 = inlined_call_operand.hbm [shape: f32[1,8], index: 1, kind: input, shape index: {}]   ;;  %s165_s2 = inlined_call_operand.hbm [shape: f32[1,8], index: 2, kind: output, shape index: {}]  }
   0x1   :  { %8 = vsyncpa [#allocation3], 0 }
   0x2   :  { %9 = vsyncpa [#allocation4], 0  ;;  %s15_s11 = sshll.u32 %s163_s0, 4  ;;  %s24_s14 = sshll.u32 %s164_s1, 4  ;;  %s16_s11 = int_to_ptr.hbm [resolvable:$true] %s15_s11  ;;  %s25_s14 = int_to_ptr.hbm [resolvable:$true] %s24_s14 }
   0x3   :  { %s136_s15 = smov [#allocation2]   ;;  %s137_s16 = smov [#allocation6]  }
   0x4   :  { %18 = dma.hbm_to_smem %s16_s11, 16, %s136_s15, [#allocation5]  }
   0x5   :  { %s26_s17 = sshll.u32 %s137_s16, 4  ;;  %s27_s17 = int_to_ptr.vmem [resolvable:$true] %s26_s17 }
   0x6   :  { %29 = dma.hbm_to_vmem [thread:$0]  %s25_s14, 16, %s27_s17, [#allocation3]  }
   0x7   :  { %130 = dma.done.wait [#allocation5], 16  }
   0x8   :  { %131 = vsyncadd [#allocation5], 4294967280 }
   0x9   :  { %132 = dma.done.wait [#allocation3], 16  }
   0xa   :  { %133 = vsyncadd [#allocation3], 4294967280 }
   0xb   :  { %38 = sfence }
   0xc   :  { %s39_s18 = sld [smem:[#allocation2]]  ;;  %v41_v0 = vld [vmem:[#allocation6] sm:$0x1]  ;;  %s138_s0 = smov [#allocation7]   ;;  %vm46_vm0 = vcmask 57344  }
   0xd   :  { %s66_s19 = sld [smem:[#allocation2 + $0x1]]  ;;  %s53_s20 = sshll.u32 %s138_s0, 4  ;;  %s54_s20 = int_to_ptr.vmem [resolvable:$true] %s53_s20 }
   0xe   :  { %s55_s22 = sshll.u32 %s165_s2, 4  ;;  %s56_s22 = int_to_ptr.hbm [resolvable:$true] %s55_s22 }
  0x12   :  { %v42_v1 = vstv %s39_s18 }
  0x13   :  { %v43_v2 = vmul.f32 %v42_v1, %v41_v0  ;;  %v44_v3 = vstv %s66_s19 }
  0x15   :  { %v45_v4 = vadd.f32 %v44_v3, %v43_v2 }
  0x17   :  { %47 = vst.msk [vmem:[#allocation7] sm:$0x1] %vm46_vm0, %v45_v4 }
  0x18   :  { %58 = dma.vmem_to_hbm [thread:$0]  %s54_s20, 16, %s56_s22, [#allocation4]  }
  0x19   :  { %134 = dma.done.wait [#allocation4], 16  }
  0x1a   :  { %135 = vsyncadd [#allocation4], 4294967280 }
  0x1b   :  { %63 = vsyncpa [#allocation3], 1 }
  0x1c   :  { %64 = vsyncpa [#allocation4], 1 }
  0x1d   :  { %65 = vsyncpa [#allocation5], 1 }

</bundles_post_ra>
